<compile_context>
chip_gen: v7x
topology: tpu7x:2x2x1
jax: 0.10.0
libtpu: 0.0.40
codegen_flags: <defaults>
</compile_context>

<pallas_src>
import math
import functools

import numpy as np
import jax
import jax.numpy as jnp
from jax.experimental import pallas as pl
from jax.experimental.pallas import tpu as pltpu


# ----------------------------- configuration -------------------------------
B = 2              # batch
S = 8              # seq_len
D = 32             # nn_embed
HQ = 4             # num_attention_heads
HKV = 2            # num_key_value_heads
HD = D // HQ       # head_dim = 8
NQ = HQ // HKV     # queries per kv head
FFN = 64           # ffn_intermediate_size
EPS = 1e-5         # rms_norm_eps

QW = HQ * HD       # 32
KW = HKV * HD      # 16


# ------------------------------- Pallas kernel ------------------------------
def llama_block_kernel(x_ref, wqkv_ref, wo_ref, wgu_ref, wd_ref,
                       cosq_ref, sinq_ref, cosk_ref, sink_ref, o_ref,
                       *, b, s, hq, hkv, hd, ffn, eps):
    nq = hq // hkv
    hdh = hd // 2
    qw = hq * hd
    kw = hkv * hd

    x = x_ref[...]                                            # (B*S, D) f32

    # -------- attention RMSNorm (gain g1 folded into wqkv rows host-side) ----
    xn = x * jax.lax.rsqrt(jnp.mean(x * x, axis=-1, keepdims=True) + eps)

    # -------- fused Q|K|V projection (single MXU call, width qw+2*kw) --------
    qkv = jnp.dot(xn.astype(jnp.bfloat16), wqkv_ref[...],
                  preferred_element_type=jnp.float32)         # (B*S, qw+2kw)
    q = qkv[:, :qw]
    k = qkv[:, qw:qw + kw]
    v = qkv[:, qw + kw:]

    # -------- group into (G = HKV*B, rows, HD) with K/V dedup ----------------
    # Per-head lane slices are done once over all rows; the per-batch splits
    # below are sublane-aligned row slices (cheap).  q rows within a group are
    # n-major: row = n*S + s_q  (query head h = kv*nq + n).
    q_heads = [q[:, h * hd:(h + 1) * hd] for h in range(hq)]      # (B*S, HD)
    k_heads = [k[:, g * hd:(g + 1) * hd] for g in range(hkv)]     # (B*S, HD)
    v_heads = [v[:, g * hd:(g + 1) * hd] for g in range(hkv)]

    q_groups, k_groups, v_groups = [], [], []
    for g in range(hkv):
        for bb in range(b):
            rs = slice(bb * s, (bb + 1) * s)
            q_groups.append(jnp.concatenate(
                [q_heads[g * nq + n][rs] for n in range(nq)], axis=0))  # (nq*S, HD)
            k_groups.append(k_heads[g][rs])                             # (S, HD)
            v_groups.append(v_heads[g][rs])
    qg = jnp.stack(q_groups, axis=0)          # (G, nq*S, HD)
    kg = jnp.stack(k_groups, axis=0)          # (G, S,    HD)
    vg = jnp.stack(v_groups, axis=0)          # (G, S,    HD)

    # -------- rotate-half RoPE (weights host-permuted; scale folded into cosq/sinq)
    cq, sq = cosq_ref[...], sinq_ref[...]     # (S, HD//2) f32
    ck, sk = cosk_ref[...], sink_ref[...]
    cos_k = jnp.concatenate([ck, ck], axis=-1)                  # (S, HD)
    sin_k = jnp.concatenate([-sk, sk], axis=-1)                 # sign folded
    cos_q1 = jnp.concatenate([cq, cq], axis=-1)
    sin_q1 = jnp.concatenate([-sq, sq], axis=-1)
    cos_q = jnp.concatenate([cos_q1] * nq, axis=0)              # (nq*S, HD), n-major
    sin_q = jnp.concatenate([sin_q1] * nq, axis=0)

    def half_swap(t):  # swap the two HD/2 halves (== pltpu.roll(t, hd//2, -1))
        return jnp.concatenate([t[..., hdh:], t[..., :hdh]], axis=-1)

    qg = qg * cos_q[None] + half_swap(qg) * sin_q[None]
    kg = kg * cos_k[None] + half_swap(kg) * sin_k[None]

    # -------- GQA attention, batched over (kv head, batch) groups ------------
    scores = jnp.einsum('gqd,gkd->gqk',
                        qg.astype(jnp.bfloat16), kg.astype(jnp.bfloat16),
                        preferred_element_type=jnp.float32)     # (G, nq*S, S)

    # causal mask built in-kernel (rows are n-major -> s_q = row % S)
    r = jax.lax.broadcasted_iota(jnp.int32, (nq * s, s), 0)
    c = jax.lax.broadcasted_iota(jnp.int32, (nq * s, s), 1)
    addmask = jnp.where((r % s) >= c, 0.0, -1e30).astype(jnp.float32)
    scores = scores + addmask[None]

    m = jnp.max(scores, axis=-1, keepdims=True)
    e = jnp.exp(scores - m)                                     # EUP
    p = e * pl.reciprocal(jnp.sum(e, axis=-1, keepdims=True), approx=True)

    ctx = jnp.einsum('gqk,gkd->gqd',
                     p.astype(jnp.bfloat16), vg.astype(jnp.bfloat16),
                     preferred_element_type=jnp.float32)        # (G, nq*S, HD)

    # -------- un-group back to (B*S, D) in the original head order -----------
    rows = []
    for bb in range(b):
        cols = []
        for g in range(hkv):
            cg = ctx[g * b + bb]                                # (nq*S, HD)
            cols.extend([cg[n * s:(n + 1) * s] for n in range(nq)])  # (S, HD)
        rows.append(jnp.concatenate(cols, axis=-1))             # (S, D)
    attn = jnp.concatenate(rows, axis=0)                        # (B*S, D)

    h1 = x + jnp.dot(attn.astype(jnp.bfloat16), wo_ref[...],
                     preferred_element_type=jnp.float32)        # residual 1

    # -------- FFN RMSNorm (g2 folded into wgu rows) + SwiGLU ------------------
    hn = h1 * jax.lax.rsqrt(jnp.mean(h1 * h1, axis=-1, keepdims=True) + eps)
    gu = jnp.dot(hn.astype(jnp.bfloat16), wgu_ref[...],
                 preferred_element_type=jnp.float32)            # (B*S, 2*FFN)
    gate = gu[:, :ffn]
    up = gu[:, ffn:]
    act = gate * jax.nn.sigmoid(gate) * up                      # SiLU * up, f32
    o_ref[...] = h1 + jnp.dot(act.astype(jnp.bfloat16), wd_ref[...],
                              preferred_element_type=jnp.float32)


# ------------------------------- wrapper ------------------------------------
def llama_block(x, kp):
    """x: (B, S, D) float32 -> (B, S, D) float32."""
    b, s, d = x.shape
    x2 = x.reshape(b * s, d)

    kern = functools.partial(llama_block_kernel, b=b, s=s, hq=HQ, hkv=HKV,
                             hd=HD, ffn=FFN, eps=EPS)

    inputs = (x2, kp["wqkv"], kp["wo"], kp["wgu"], kp["wd"],
              kp["cosq"], kp["sinq"], kp["cosk"], kp["sink"])

    # Single grid step: everything fits in VMEM at these shapes.  At real dims
    # the row axis would be tiled (parallel, multiple of 2 for v7x's two TCs)
    # and weights streamed with vmem_limit_bytes sized per generation.
    in_specs = [pl.BlockSpec(a.shape, lambda i, nd=a.ndim: (0,) * nd)
                for a in inputs]

    out2 = pl.pallas_call(
        kern,
        out_shape=jax.ShapeDtypeStruct((b * s, d), jnp.float32),
        grid=(1,),
        in_specs=in_specs,
        out_specs=pl.BlockSpec((b * s, d), lambda i: (0, 0)),
        compiler_params=pltpu.CompilerParams(dimension_semantics=("arbitrary",)),
    )(*inputs)
    return out2.reshape(b, s, d)


# ------------------ host-side weight fusion / RoPE tables -------------------
def precompute_rotary_emb(dim, max_seq_len, base=10000):
    position = np.arange(max_seq_len)[:, None].astype(np.float32)
    div_term = np.exp(np.arange(0, dim, 2).astype(np.float32) *
                      (-math.log(base) / dim))
    angles = position * div_term
    return jnp.asarray(np.sin(angles)), jnp.asarray(np.cos(angles))


def build_kernel_params(p, sin, cos):
    scale = 1.0 / math.sqrt(HD)

    # interleaved -> rotate-half column permutation within each head's HD block
    def rh_perm(n_heads):
        dloc = np.arange(HD)
        perm_head = np.concatenate([dloc[0::2], dloc[1::2]])    # old idx per new pos
        return (np.arange(n_heads)[:, None] * HD + perm_head[None, :]).reshape(-1)

    wq = p["wq"][:, rh_perm(HQ)]
    wk = p["wk"][:, rh_perm(HKV)]

    # fold RMSNorm gains into the rows of the fused projection weights
    g1 = p["g1"].reshape(-1, 1)
    g2 = p["g2"].reshape(-1, 1)
    wqkv = jnp.concatenate([wq, wk, p["wv"]], axis=1) * g1      # (D, QW+2*KW)
    wgu = jnp.concatenate([p["wg"], p["wu"]], axis=1) * g2      # (D, 2*FFN)

    cosb = cos[:S].astype(jnp.float32)                          # (S, HD//2)
    sinb = sin[:S].astype(jnp.float32)

    return {
        "wqkv": wqkv.astype(jnp.bfloat16),
        "wo": p["wo"].astype(jnp.bfloat16),
        "wgu": wgu.astype(jnp.bfloat16),
        "wd": p["wd"].astype(jnp.bfloat16),
        # softmax scale folded into the q rotary tables (kept f32)
        "cosq": cosb * scale, "sinq": sinb * scale,
        "cosk": cosb, "sink": sinb,
    }


# ------------------------- pure-JAX reference (torch semantics) -------------
def apply_rotary_emb_ref(x, sin, cos):
    xr = x.reshape(*x.shape[:-1], -1, 2)
    x1, x2 = xr[..., 0], xr[..., 1]
    sin = sin.reshape(1, sin.shape[0], 1, sin.shape[1])
    cos = cos.reshape(1, cos.shape[0], 1, cos.shape[1])
    out = jnp.stack([x1 * cos - x2 * sin, x2 * cos + x1 * sin], axis=-1)
    return out.reshape(*x.shape)


def llama_block_ref(x, params, mask, sin, cos):
    def rmsnorm(v, g):
        return v * jax.lax.rsqrt(jnp.mean(v * v, axis=-1, keepdims=True) + EPS) * g

    b, s, d = x.shape
    xn = rmsnorm(x, params["g1"][0])
    q = (xn @ params["wq"]).reshape(b, s, HQ, HD)
    k = (xn @ params["wk"]).reshape(b, s, HKV, HD)
    v = (xn @ params["wv"]).reshape(b, s, HKV, HD)
    q = apply_rotary_emb_ref(q, sin[:s], cos[:s])
    k = apply_rotary_emb_ref(k, sin[:s], cos[:s])
    q = q.transpose(0, 2, 1, 3)
    k = k.transpose(0, 2, 1, 3)
    v = v.transpose(0, 2, 1, 3)
    if NQ > 1:
        k = jnp.repeat(k, NQ, axis=1)
        v = jnp.repeat(v, NQ, axis=1)
    scores = jnp.einsum("bhqd,bhkd->bhqk", q, k) / math.sqrt(HD)
    scores = jnp.where(mask == 0, -jnp.inf, scores)
    attn = jax.nn.softmax(scores, axis=-1)
    out = jnp.einsum("bhqk,bhkd->bhqd", attn, v)
    out = out.transpose(0, 2, 1, 3).reshape(b, s, d)
    x = x + out @ params["wo"]
    hn = rmsnorm(x, params["g2"][0])
    gate = hn @ params["wg"]
    up = hn @ params["wu"]
    return x + (gate * jax.nn.sigmoid(gate) * up) @ params["wd"]


# --------------------------------- main --------------------------------------
if __name__ == "__main__":
    key = jax.random.PRNGKey(0)
    ks = jax.random.split(key, 9)

    def init(k, shp):
        w = 0.05 * jax.random.normal(k, shp)
        # round to bf16 grid so kernel (bf16 operands) and f32 reference share weights
        return w.astype(jnp.bfloat16).astype(jnp.float32)

    sin, cos = precompute_rotary_emb(HD, 2048)     # (max_seq, HD//2)

    params = {
        "wq": init(ks[0], (D, QW)),
        "wk": init(ks[1], (D, KW)),
        "wv": init(ks[2], (D, KW)),
        "wo": init(ks[3], (D, D)),
        "wg": init(ks[4], (D, FFN)),
        "wu": init(ks[5], (D, FFN)),
        "wd": init(ks[6], (FFN, D)),
        "g1": jnp.ones((1, D), jnp.float32),       # nn.RMSNorm weight init = ones
        "g2": jnp.ones((1, D), jnp.float32),
    }
    kp = build_kernel_params(params, sin, cos)

    x = jax.random.normal(ks[7], (B, S, D), dtype=jnp.float32)
    mask01 = jnp.tril(jnp.ones((S, S), jnp.float32))           # reference mask

    out = jax.block_until_ready(llama_block(x, kp))
    ref = jax.block_until_ready(llama_block_ref(x, params, mask01, sin, cos))

    assert out.shape == (B, S, D)
    assert bool(jnp.all(jnp.isfinite(out)))
    # bf16 matmul operands + approx reciprocal -> compare at ~2e-2
    np.testing.assert_allclose(np.asarray(out), np.asarray(ref),
                               rtol=2e-2, atol=2e-2)
    print("KERNEL_OK")
</pallas_src>

<mosaic_0001>
module attributes {stable_mosaic.version = 11 : i64} {
  func.func @llama_block_kernel(%arg0: i32, %arg1: memref<16x32xf32, #tpu.memory_space<vmem>>, %arg2: memref<32x64xbf16, #tpu.memory_space<vmem>>, %arg3: memref<32x32xbf16, #tpu.memory_space<vmem>>, %arg4: memref<32x128xbf16, #tpu.memory_space<vmem>>, %arg5: memref<64x32xbf16, #tpu.memory_space<vmem>>, %arg6: memref<8x4xf32, #tpu.memory_space<vmem>>, %arg7: memref<8x4xf32, #tpu.memory_space<vmem>>, %arg8: memref<8x4xf32, #tpu.memory_space<vmem>>, %arg9: memref<8x4xf32, #tpu.memory_space<vmem>>, %arg10: memref<16x32xf32, #tpu.memory_space<vmem>>) attributes {dimension_semantics = [#tpu.dimension_semantics<arbitrary>], iteration_bounds = array<i64: 1>, scalar_prefetch = 0 : i64, scratch_operands = 0 : i64, tpu.core_type = #tpu.core_type<tc>, window_params = [{pipeline_mode = #tpu.pipeline_mode<synchronous>, transform_indices = @transform_0, window_bounds = array<i64: 16, 32>}, {pipeline_mode = #tpu.pipeline_mode<synchronous>, transform_indices = @transform_1, window_bounds = array<i64: 32, 64>}, {pipeline_mode = #tpu.pipeline_mode<synchronous>, transform_indices = @transform_2, window_bounds = array<i64: 32, 32>}, {pipeline_mode = #tpu.pipeline_mode<synchronous>, transform_indices = @transform_3, window_bounds = array<i64: 32, 128>}, {pipeline_mode = #tpu.pipeline_mode<synchronous>, transform_indices = @transform_4, window_bounds = array<i64: 64, 32>}, {pipeline_mode = #tpu.pipeline_mode<synchronous>, transform_indices = @transform_5, window_bounds = array<i64: 8, 4>}, {pipeline_mode = #tpu.pipeline_mode<synchronous>, transform_indices = @transform_6, window_bounds = array<i64: 8, 4>}, {pipeline_mode = #tpu.pipeline_mode<synchronous>, transform_indices = @transform_7, window_bounds = array<i64: 8, 4>}, {pipeline_mode = #tpu.pipeline_mode<synchronous>, transform_indices = @transform_8, window_bounds = array<i64: 8, 4>}, {pipeline_mode = #tpu.pipeline_mode<synchronous>, transform_indices = @transform_9, window_bounds = array<i64: 16, 32>}]} {
    %c0 = arith.constant 0 : index
    %c0_0 = arith.constant 0 : index
    %0 = vector.load %arg1[%c0, %c0_0] : memref<16x32xf32, #tpu.memory_space<vmem>>, vector<16x32xf32>
    %1 = arith.mulf %0, %0 : vector<16x32xf32>
    %cst = arith.constant dense<0.000000e+00> : vector<16xf32>
    %2 = vector.multi_reduction <add>, %1, %cst [1] : vector<16x32xf32> to vector<16xf32>
    %3 = vector.shape_cast %2 : vector<16xf32> to vector<16x1xf32>
    %cst_1 = arith.constant 3.200000e+01 : f32
    %4 = vector.broadcast %cst_1 : f32 to vector<16x1xf32>
    %5 = arith.divf %3, %4 : vector<16x1xf32>
    %cst_2 = arith.constant 9.99999974E-6 : f32
    %6 = vector.broadcast %cst_2 : f32 to vector<16x1xf32>
    %7 = arith.addf %5, %6 : vector<16x1xf32>
    %8 = math.rsqrt %7 : vector<16x1xf32>
    %9 = vector.broadcast %8 : vector<16x1xf32> to vector<16x32xf32>
    %10 = arith.mulf %0, %9 : vector<16x32xf32>
    %11 = arith.truncf %10 : vector<16x32xf32> to vector<16x32xbf16>
    %c0_3 = arith.constant 0 : index
    %c0_4 = arith.constant 0 : index
    %12 = vector.load %arg2[%c0_3, %c0_4] : memref<32x64xbf16, #tpu.memory_space<vmem>>, vector<32x64xbf16>
    %cst_5 = arith.constant dense<0.000000e+00> : vector<16x64xf32>
    %13 = tpu.matmul %11, %12, %cst_5 {dimension_numbers = #tpu.dot_dimension_numbers<[1], [0], [0], [1], [0, 0, 1, 1], [], []>} : vector<16x32xbf16>, vector<32x64xbf16>, vector<16x64xf32> -> vector<16x64xf32>
    %14 = vector.extract_strided_slice %13 {offsets = [0, 0], sizes = [16, 32], strides = [1, 1]} : vector<16x64xf32> to vector<16x32xf32>
    %15 = vector.extract_strided_slice %13 {offsets = [0, 32], sizes = [16, 16], strides = [1, 1]} : vector<16x64xf32> to vector<16x16xf32>
    %16 = vector.extract_strided_slice %13 {offsets = [0, 48], sizes = [16, 16], strides = [1, 1]} : vector<16x64xf32> to vector<16x16xf32>
    %17 = vector.extract_strided_slice %14 {offsets = [0, 0], sizes = [16, 8], strides = [1, 1]} : vector<16x32xf32> to vector<16x8xf32>
    %18 = vector.extract_strided_slice %14 {offsets = [0, 8], sizes = [16, 8], strides = [1, 1]} : vector<16x32xf32> to vector<16x8xf32>
    %19 = vector.extract_strided_slice %14 {offsets = [0, 16], sizes = [16, 8], strides = [1, 1]} : vector<16x32xf32> to vector<16x8xf32>
    %20 = vector.extract_strided_slice %14 {offsets = [0, 24], sizes = [16, 8], strides = [1, 1]} : vector<16x32xf32> to vector<16x8xf32>
    %21 = vector.extract_strided_slice %15 {offsets = [0, 0], sizes = [16, 8], strides = [1, 1]} : vector<16x16xf32> to vector<16x8xf32>
    %22 = vector.extract_strided_slice %15 {offsets = [0, 8], sizes = [16, 8], strides = [1, 1]} : vector<16x16xf32> to vector<16x8xf32>
    %23 = vector.extract_strided_slice %16 {offsets = [0, 0], sizes = [16, 8], strides = [1, 1]} : vector<16x16xf32> to vector<16x8xf32>
    %24 = vector.extract_strided_slice %16 {offsets = [0, 8], sizes = [16, 8], strides = [1, 1]} : vector<16x16xf32> to vector<16x8xf32>
    %25 = vector.extract_strided_slice %17 {offsets = [0, 0], sizes = [8, 8], strides = [1, 1]} : vector<16x8xf32> to vector<8x8xf32>
    %26 = vector.extract_strided_slice %18 {offsets = [0, 0], sizes = [8, 8], strides = [1, 1]} : vector<16x8xf32> to vector<8x8xf32>
    %27 = tpu.concatenate %25, %26 in 0 : vector<8x8xf32>, vector<8x8xf32> -> vector<16x8xf32>
    %28 = vector.extract_strided_slice %21 {offsets = [0, 0], sizes = [8, 8], strides = [1, 1]} : vector<16x8xf32> to vector<8x8xf32>
    %29 = vector.extract_strided_slice %23 {offsets = [0, 0], sizes = [8, 8], strides = [1, 1]} : vector<16x8xf32> to vector<8x8xf32>
    %30 = vector.extract_strided_slice %17 {offsets = [8, 0], sizes = [8, 8], strides = [1, 1]} : vector<16x8xf32> to vector<8x8xf32>
    %31 = vector.extract_strided_slice %18 {offsets = [8, 0], sizes = [8, 8], strides = [1, 1]} : vector<16x8xf32> to vector<8x8xf32>
    %32 = tpu.concatenate %30, %31 in 0 : vector<8x8xf32>, vector<8x8xf32> -> vector<16x8xf32>
    %33 = vector.extract_strided_slice %21 {offsets = [8, 0], sizes = [8, 8], strides = [1, 1]} : vector<16x8xf32> to vector<8x8xf32>
    %34 = vector.extract_strided_slice %23 {offsets = [8, 0], sizes = [8, 8], strides = [1, 1]} : vector<16x8xf32> to vector<8x8xf32>
    %35 = vector.extract_strided_slice %19 {offsets = [0, 0], sizes = [8, 8], strides = [1, 1]} : vector<16x8xf32> to vector<8x8xf32>
    %36 = vector.extract_strided_slice %20 {offsets = [0, 0], sizes = [8, 8], strides = [1, 1]} : vector<16x8xf32> to vector<8x8xf32>
    %37 = tpu.concatenate %35, %36 in 0 : vector<8x8xf32>, vector<8x8xf32> -> vector<16x8xf32>
    %38 = vector.extract_strided_slice %22 {offsets = [0, 0], sizes = [8, 8], strides = [1, 1]} : vector<16x8xf32> to vector<8x8xf32>
    %39 = vector.extract_strided_slice %24 {offsets = [0, 0], sizes = [8, 8], strides = [1, 1]} : vector<16x8xf32> to vector<8x8xf32>
    %40 = vector.extract_strided_slice %19 {offsets = [8, 0], sizes = [8, 8], strides = [1, 1]} : vector<16x8xf32> to vector<8x8xf32>
    %41 = vector.extract_strided_slice %20 {offsets = [8, 0], sizes = [8, 8], strides = [1, 1]} : vector<16x8xf32> to vector<8x8xf32>
    %42 = tpu.concatenate %40, %41 in 0 : vector<8x8xf32>, vector<8x8xf32> -> vector<16x8xf32>
    %43 = vector.extract_strided_slice %22 {offsets = [8, 0], sizes = [8, 8], strides = [1, 1]} : vector<16x8xf32> to vector<8x8xf32>
    %44 = vector.extract_strided_slice %24 {offsets = [8, 0], sizes = [8, 8], strides = [1, 1]} : vector<16x8xf32> to vector<8x8xf32>
    %45 = vector.shape_cast %27 : vector<16x8xf32> to vector<1x16x8xf32>
    %46 = vector.shape_cast %32 : vector<16x8xf32> to vector<1x16x8xf32>
    %47 = vector.shape_cast %37 : vector<16x8xf32> to vector<1x16x8xf32>
    %48 = vector.shape_cast %42 : vector<16x8xf32> to vector<1x16x8xf32>
    %49 = tpu.concatenate %45, %46, %47, %48 in 0 : vector<1x16x8xf32>, vector<1x16x8xf32>, vector<1x16x8xf32>, vector<1x16x8xf32> -> vector<4x16x8xf32>
    %50 = vector.shape_cast %28 : vector<8x8xf32> to vector<1x8x8xf32>
    %51 = vector.shape_cast %33 : vector<8x8xf32> to vector<1x8x8xf32>
    %52 = vector.shape_cast %38 : vector<8x8xf32> to vector<1x8x8xf32>
    %53 = vector.shape_cast %43 : vector<8x8xf32> to vector<1x8x8xf32>
    %54 = tpu.concatenate %50, %51, %52, %53 in 0 : vector<1x8x8xf32>, vector<1x8x8xf32>, vector<1x8x8xf32>, vector<1x8x8xf32> -> vector<4x8x8xf32>
    %55 = vector.shape_cast %29 : vector<8x8xf32> to vector<1x8x8xf32>
    %56 = vector.shape_cast %34 : vector<8x8xf32> to vector<1x8x8xf32>
    %57 = vector.shape_cast %39 : vector<8x8xf32> to vector<1x8x8xf32>
    %58 = vector.shape_cast %44 : vector<8x8xf32> to vector<1x8x8xf32>
    %59 = tpu.concatenate %55, %56, %57, %58 in 0 : vector<1x8x8xf32>, vector<1x8x8xf32>, vector<1x8x8xf32>, vector<1x8x8xf32> -> vector<4x8x8xf32>
    %c0_6 = arith.constant 0 : index
    %c0_7 = arith.constant 0 : index
    %60 = vector.load %arg6[%c0_6, %c0_7] : memref<8x4xf32, #tpu.memory_space<vmem>>, vector<8x4xf32>
    %c0_8 = arith.constant 0 : index
    %c0_9 = arith.constant 0 : index
    %61 = vector.load %arg7[%c0_8, %c0_9] : memref<8x4xf32, #tpu.memory_space<vmem>>, vector<8x4xf32>
    %c0_10 = arith.constant 0 : index
    %c0_11 = arith.constant 0 : index
    %62 = vector.load %arg8[%c0_10, %c0_11] : memref<8x4xf32, #tpu.memory_space<vmem>>, vector<8x4xf32>
    %c0_12 = arith.constant 0 : index
    %c0_13 = arith.constant 0 : index
    %63 = vector.load %arg9[%c0_12, %c0_13] : memref<8x4xf32, #tpu.memory_space<vmem>>, vector<8x4xf32>
    %64 = tpu.concatenate %62, %62 in 1 : vector<8x4xf32>, vector<8x4xf32> -> vector<8x8xf32>
    %cst_14 = arith.constant 0.000000e+00 : f32
    %65 = vector.broadcast %cst_14 : f32 to vector<8x4xf32>
    %66 = arith.subf %65, %63 : vector<8x4xf32>
    %67 = tpu.concatenate %66, %63 in 1 : vector<8x4xf32>, vector<8x4xf32> -> vector<8x8xf32>
    %68 = tpu.concatenate %60, %60 in 1 : vector<8x4xf32>, vector<8x4xf32> -> vector<8x8xf32>
    %cst_15 = arith.constant 0.000000e+00 : f32
    %69 = vector.broadcast %cst_15 : f32 to vector<8x4xf32>
    %70 = arith.subf %69, %61 : vector<8x4xf32>
    %71 = tpu.concatenate %70, %61 in 1 : vector<8x4xf32>, vector<8x4xf32> -> vector<8x8xf32>
    %72 = tpu.concatenate %68, %68 in 0 : vector<8x8xf32>, vector<8x8xf32> -> vector<16x8xf32>
    %73 = tpu.concatenate %71, %71 in 0 : vector<8x8xf32>, vector<8x8xf32> -> vector<16x8xf32>
    %74 = vector.shape_cast %72 : vector<16x8xf32> to vector<1x16x8xf32>
    %75 = vector.broadcast %74 : vector<1x16x8xf32> to vector<4x16x8xf32>
    %76 = arith.mulf %49, %75 : vector<4x16x8xf32>
    %77 = vector.extract_strided_slice %49 {offsets = [0, 0, 4], sizes = [4, 16, 4], strides = [1, 1, 1]} : vector<4x16x8xf32> to vector<4x16x4xf32>
    %78 = vector.extract_strided_slice %49 {offsets = [0, 0, 0], sizes = [4, 16, 4], strides = [1, 1, 1]} : vector<4x16x8xf32> to vector<4x16x4xf32>
    %79 = tpu.concatenate %77, %78 in 2 : vector<4x16x4xf32>, vector<4x16x4xf32> -> vector<4x16x8xf32>
    %80 = vector.shape_cast %73 : vector<16x8xf32> to vector<1x16x8xf32>
    %81 = vector.broadcast %80 : vector<1x16x8xf32> to vector<4x16x8xf32>
    %82 = arith.mulf %79, %81 : vector<4x16x8xf32>
    %83 = arith.addf %76, %82 : vector<4x16x8xf32>
    %84 = vector.shape_cast %64 : vector<8x8xf32> to vector<1x8x8xf32>
    %85 = vector.broadcast %84 : vector<1x8x8xf32> to vector<4x8x8xf32>
    %86 = arith.mulf %54, %85 : vector<4x8x8xf32>
    %87 = vector.extract_strided_slice %54 {offsets = [0, 0, 4], sizes = [4, 8, 4], strides = [1, 1, 1]} : vector<4x8x8xf32> to vector<4x8x4xf32>
    %88 = vector.extract_strided_slice %54 {offsets = [0, 0, 0], sizes = [4, 8, 4], strides = [1, 1, 1]} : vector<4x8x8xf32> to vector<4x8x4xf32>
    %89 = tpu.concatenate %87, %88 in 2 : vector<4x8x4xf32>, vector<4x8x4xf32> -> vector<4x8x8xf32>
    %90 = vector.shape_cast %67 : vector<8x8xf32> to vector<1x8x8xf32>
    %91 = vector.broadcast %90 : vector<1x8x8xf32> to vector<4x8x8xf32>
    %92 = arith.mulf %89, %91 : vector<4x8x8xf32>
    %93 = arith.addf %86, %92 : vector<4x8x8xf32>
    %94 = arith.truncf %83 : vector<4x16x8xf32> to vector<4x16x8xbf16>
    %95 = arith.truncf %93 : vector<4x8x8xf32> to vector<4x8x8xbf16>
    "tpu.trace_start"() <{level = 10 : i32, message = "gqd,gkd->gqk"}> : () -> ()
    %cst_16 = arith.constant dense<0.000000e+00> : vector<4x16x8xf32>
    %96 = tpu.matmul %94, %95, %cst_16 {dimension_numbers = #tpu.dot_dimension_numbers<[2], [2], [1], [1], [0, 0, 0, 1, 1, 1], [0], [0]>} : vector<4x16x8xbf16>, vector<4x8x8xbf16>, vector<4x16x8xf32> -> vector<4x16x8xf32>
    "tpu.trace_stop"() : () -> ()
    %97 = tpu.iota {dimensions = array<i32: 0>} : vector<16x8xi32>
    %98 = tpu.iota {dimensions = array<i32: 1>} : vector<16x8xi32>
    %c8_i32 = arith.constant 8 : i32
    %c0_i32 = arith.constant 0 : i32
    %99 = arith.cmpi eq, %c8_i32, %c0_i32 : i32
    %c1_i32 = arith.constant 1 : i32
    %100 = arith.select %99, %c1_i32, %c8_i32 : i32
    %101 = vector.broadcast %100 : i32 to vector<16x8xi32>
    %102 = arith.remsi %97, %101 : vector<16x8xi32>
    %c0_i32_17 = arith.constant 0 : i32
    %103 = vector.broadcast %c0_i32_17 : i32 to vector<16x8xi32>
    %104 = arith.cmpi ne, %102, %103 : vector<16x8xi32>
    %c0_i32_18 = arith.constant 0 : i32
    %105 = vector.broadcast %c0_i32_18 : i32 to vector<16x8xi32>
    %106 = arith.cmpi slt, %102, %105 : vector<16x8xi32>
    %c0_i32_19 = arith.constant 0 : i32
    %107 = arith.cmpi slt, %100, %c0_i32_19 : i32
    %108 = vector.broadcast %107 : i1 to vector<16x8xi1>
    %109 = vector.broadcast %108 : vector<16x8xi1> to vector<16x8xi1>
    %110 = arith.xori %106, %109 : vector<16x8xi1>
    %111 = arith.andi %110, %104 : vector<16x8xi1>
    %112 = vector.broadcast %100 : i32 to vector<16x8xi32>
    %113 = arith.addi %102, %112 : vector<16x8xi32>
    %114 = arith.select %111, %113, %102 : vector<16x8xi1>, vector<16x8xi32>
    %115 = arith.cmpi sge, %114, %98 : vector<16x8xi32>
    %cst_20 = arith.constant 0.000000e+00 : f32
    %cst_21 = arith.constant -1.000000e+30 : f32
    %116 = vector.broadcast %cst_20 : f32 to vector<16x8xf32>
    %117 = vector.broadcast %cst_21 : f32 to vector<16x8xf32>
    %118 = arith.select %115, %116, %117 : vector<16x8xi1>, vector<16x8xf32>
    %119 = vector.shape_cast %118 : vector<16x8xf32> to vector<1x16x8xf32>
    %120 = vector.broadcast %119 : vector<1x16x8xf32> to vector<4x16x8xf32>
    %121 = arith.addf %96, %120 : vector<4x16x8xf32>
    %cst_22 = arith.constant dense<0xFF800000> : vector<4x16xf32>
    %122 = vector.multi_reduction <maximumf>, %121, %cst_22 [2] : vector<4x16x8xf32> to vector<4x16xf32>
    %123 = vector.shape_cast %122 : vector<4x16xf32> to vector<4x16x1xf32>
    %124 = vector.broadcast %123 : vector<4x16x1xf32> to vector<4x16x8xf32>
    %125 = arith.subf %121, %124 : vector<4x16x8xf32>
    %126 = math.exp %125 : vector<4x16x8xf32>
    %cst_23 = arith.constant dense<0.000000e+00> : vector<4x16xf32>
    %127 = vector.multi_reduction <add>, %126, %cst_23 [2] : vector<4x16x8xf32> to vector<4x16xf32>
    %128 = vector.shape_cast %127 : vector<4x16xf32> to vector<4x16x1xf32>
    %129 = tpu.reciprocal %128 {approx = true} : vector<4x16x1xf32> -> vector<4x16x1xf32>
    %130 = vector.broadcast %129 : vector<4x16x1xf32> to vector<4x16x8xf32>
    %131 = arith.mulf %126, %130 : vector<4x16x8xf32>
    %132 = arith.truncf %131 : vector<4x16x8xf32> to vector<4x16x8xbf16>
    %133 = arith.truncf %59 : vector<4x8x8xf32> to vector<4x8x8xbf16>
    "tpu.trace_start"() <{level = 10 : i32, message = "gqk,gkd->gqd"}> : () -> ()
    %cst_24 = arith.constant dense<0.000000e+00> : vector<4x16x8xf32>
    %134 = tpu.matmul %132, %133, %cst_24 {dimension_numbers = #tpu.dot_dimension_numbers<[2], [1], [1], [2], [0, 0, 0, 1, 1, 2], [0], [0]>} : vector<4x16x8xbf16>, vector<4x8x8xbf16>, vector<4x16x8xf32> -> vector<4x16x8xf32>
    "tpu.trace_stop"() : () -> ()
    %135 = vector.extract_strided_slice %134 {offsets = [0, 0, 0], sizes = [1, 16, 8], strides = [1, 1, 1]} : vector<4x16x8xf32> to vector<1x16x8xf32>
    %136 = vector.shape_cast %135 : vector<1x16x8xf32> to vector<16x8xf32>
    %137 = vector.extract_strided_slice %136 {offsets = [0, 0], sizes = [8, 8], strides = [1, 1]} : vector<16x8xf32> to vector<8x8xf32>
    %138 = vector.extract_strided_slice %136 {offsets = [8, 0], sizes = [8, 8], strides = [1, 1]} : vector<16x8xf32> to vector<8x8xf32>
    %139 = vector.extract_strided_slice %134 {offsets = [2, 0, 0], sizes = [1, 16, 8], strides = [1, 1, 1]} : vector<4x16x8xf32> to vector<1x16x8xf32>
    %140 = vector.shape_cast %139 : vector<1x16x8xf32> to vector<16x8xf32>
    %141 = vector.extract_strided_slice %140 {offsets = [0, 0], sizes = [8, 8], strides = [1, 1]} : vector<16x8xf32> to vector<8x8xf32>
    %142 = vector.extract_strided_slice %140 {offsets = [8, 0], sizes = [8, 8], strides = [1, 1]} : vector<16x8xf32> to vector<8x8xf32>
    %143 = tpu.concatenate %137, %138, %141, %142 in 1 : vector<8x8xf32>, vector<8x8xf32>, vector<8x8xf32>, vector<8x8xf32> -> vector<8x32xf32>
    %144 = vector.extract_strided_slice %134 {offsets = [1, 0, 0], sizes = [1, 16, 8], strides = [1, 1, 1]} : vector<4x16x8xf32> to vector<1x16x8xf32>
    %145 = vector.shape_cast %144 : vector<1x16x8xf32> to vector<16x8xf32>
    %146 = vector.extract_strided_slice %145 {offsets = [0, 0], sizes = [8, 8], strides = [1, 1]} : vector<16x8xf32> to vector<8x8xf32>
    %147 = vector.extract_strided_slice %145 {offsets = [8, 0], sizes = [8, 8], strides = [1, 1]} : vector<16x8xf32> to vector<8x8xf32>
    %148 = vector.extract_strided_slice %134 {offsets = [3, 0, 0], sizes = [1, 16, 8], strides = [1, 1, 1]} : vector<4x16x8xf32> to vector<1x16x8xf32>
    %149 = vector.shape_cast %148 : vector<1x16x8xf32> to vector<16x8xf32>
    %150 = vector.extract_strided_slice %149 {offsets = [0, 0], sizes = [8, 8], strides = [1, 1]} : vector<16x8xf32> to vector<8x8xf32>
    %151 = vector.extract_strided_slice %149 {offsets = [8, 0], sizes = [8, 8], strides = [1, 1]} : vector<16x8xf32> to vector<8x8xf32>
    %152 = tpu.concatenate %146, %147, %150, %151 in 1 : vector<8x8xf32>, vector<8x8xf32>, vector<8x8xf32>, vector<8x8xf32> -> vector<8x32xf32>
    %153 = tpu.concatenate %143, %152 in 0 : vector<8x32xf32>, vector<8x32xf32> -> vector<16x32xf32>
    %154 = arith.truncf %153 : vector<16x32xf32> to vector<16x32xbf16>
    %c0_25 = arith.constant 0 : index
    %c0_26 = arith.constant 0 : index
    %155 = vector.load %arg3[%c0_25, %c0_26] : memref<32x32xbf16, #tpu.memory_space<vmem>>, vector<32x32xbf16>
    %cst_27 = arith.constant dense<0.000000e+00> : vector<16x32xf32>
    %156 = tpu.matmul %154, %155, %cst_27 {dimension_numbers = #tpu.dot_dimension_numbers<[1], [0], [0], [1], [0, 0, 1, 1], [], []>} : vector<16x32xbf16>, vector<32x32xbf16>, vector<16x32xf32> -> vector<16x32xf32>
    %157 = arith.addf %0, %156 : vector<16x32xf32>
    %158 = arith.mulf %157, %157 : vector<16x32xf32>
    %cst_28 = arith.constant dense<0.000000e+00> : vector<16xf32>
    %159 = vector.multi_reduction <add>, %158, %cst_28 [1] : vector<16x32xf32> to vector<16xf32>
    %160 = vector.shape_cast %159 : vector<16xf32> to vector<16x1xf32>
    %cst_29 = arith.constant 3.200000e+01 : f32
    %161 = vector.broadcast %cst_29 : f32 to vector<16x1xf32>
    %162 = arith.divf %160, %161 : vector<16x1xf32>
    %cst_30 = arith.constant 9.99999974E-6 : f32
    %163 = vector.broadcast %cst_30 : f32 to vector<16x1xf32>
    %164 = arith.addf %162, %163 : vector<16x1xf32>
    %165 = math.rsqrt %164 : vector<16x1xf32>
    %166 = vector.broadcast %165 : vector<16x1xf32> to vector<16x32xf32>
    %167 = arith.mulf %157, %166 : vector<16x32xf32>
    %168 = arith.truncf %167 : vector<16x32xf32> to vector<16x32xbf16>
    %c0_31 = arith.constant 0 : index
    %c0_32 = arith.constant 0 : index
    %169 = vector.load %arg4[%c0_31, %c0_32] : memref<32x128xbf16, #tpu.memory_space<vmem>>, vector<32x128xbf16>
    %cst_33 = arith.constant dense<0.000000e+00> : vector<16x128xf32>
    %170 = tpu.matmul %168, %169, %cst_33 {dimension_numbers = #tpu.dot_dimension_numbers<[1], [0], [0], [1], [0, 0, 1, 1], [], []>} : vector<16x32xbf16>, vector<32x128xbf16>, vector<16x128xf32> -> vector<16x128xf32>
    %171 = vector.extract_strided_slice %170 {offsets = [0, 0], sizes = [16, 64], strides = [1, 1]} : vector<16x128xf32> to vector<16x64xf32>
    %172 = vector.extract_strided_slice %170 {offsets = [0, 64], sizes = [16, 64], strides = [1, 1]} : vector<16x128xf32> to vector<16x64xf32>
    %173 = arith.negf %171 : vector<16x64xf32>
    %174 = math.exp %173 : vector<16x64xf32>
    %cst_34 = arith.constant 1.000000e+00 : f32
    %175 = vector.broadcast %cst_34 : f32 to vector<16x64xf32>
    %176 = arith.addf %175, %174 : vector<16x64xf32>
    %177 = arith.divf %175, %176 : vector<16x64xf32>
    %178 = arith.mulf %171, %177 : vector<16x64xf32>
    %179 = arith.mulf %178, %172 : vector<16x64xf32>
    %180 = arith.truncf %179 : vector<16x64xf32> to vector<16x64xbf16>
    %c0_35 = arith.constant 0 : index
    %c0_36 = arith.constant 0 : index
    %181 = vector.load %arg5[%c0_35, %c0_36] : memref<64x32xbf16, #tpu.memory_space<vmem>>, vector<64x32xbf16>
    %cst_37 = arith.constant dense<0.000000e+00> : vector<16x32xf32>
    %182 = tpu.matmul %180, %181, %cst_37 {dimension_numbers = #tpu.dot_dimension_numbers<[1], [0], [0], [1], [0, 0, 1, 1], [], []>} : vector<16x64xbf16>, vector<64x32xbf16>, vector<16x32xf32> -> vector<16x32xf32>
    %183 = arith.addf %157, %182 : vector<16x32xf32>
    %c0_38 = arith.constant 0 : index
    %c0_39 = arith.constant 0 : index
    %184 = vector.load %arg10[%c0_38, %c0_39] : memref<16x32xf32, #tpu.memory_space<vmem>>, vector<16x32xf32>
    tpu.vector_store %arg10[%c0_38, %c0_39], %183 {strides = array<i32>} : memref<16x32xf32, #tpu.memory_space<vmem>>, vector<16x32xf32>,
    return
  }
  func.func @transform_0(%arg0: i32) -> (i32, i32) {
    %c0_i32 = arith.constant 0 : i32
    %c0_i32_0 = arith.constant 0 : i32
    %c0_i32_1 = arith.constant 0 : i32
    return %c0_i32, %c0_i32_0 : i32, i32
  }
  func.func @transform_1(%arg0: i32) -> (i32, i32) {
    %c0_i32 = arith.constant 0 : i32
    %c0_i32_0 = arith.constant 0 : i32
    %c0_i32_1 = arith.constant 0 : i32
    return %c0_i32, %c0_i32_0 : i32, i32
  }
  func.func @transform_2(%arg0: i32) -> (i32, i32) {
    %c0_i32 = arith.constant 0 : i32
    %c0_i32_0 = arith.constant 0 : i32
    %c0_i32_1 = arith.constant 0 : i32
    return %c0_i32, %c0_i32_0 : i32, i32
  }
  func.func @transform_3(%arg0: i32) -> (i32, i32) {
    %c0_i32 = arith.constant 0 : i32
    %c0_i32_0 = arith.constant 0 : i32
    %c0_i32_1 = arith.constant 0 : i32
    return %c0_i32, %c0_i32_0 : i32, i32
  }
  func.func @transform_4(%arg0: i32) -> (i32, i32) {
    %c0_i32 = arith.constant 0 : i32
    %c0_i32_0 = arith.constant 0 : i32
    %c0_i32_1 = arith.constant 0 : i32
    return %c0_i32, %c0_i32_0 : i32, i32
  }
  func.func @transform_5(%arg0: i32) -> (i32, i32) {
    %c0_i32 = arith.constant 0 : i32
    %c0_i32_0 = arith.constant 0 : i32
    %c0_i32_1 = arith.constant 0 : i32
    return %c0_i32, %c0_i32_0 : i32, i32
  }
  func.func @transform_6(%arg0: i32) -> (i32, i32) {
    %c0_i32 = arith.constant 0 : i32
    %c0_i32_0 = arith.constant 0 : i32
    %c0_i32_1 = arith.constant 0 : i32
    return %c0_i32, %c0_i32_0 : i32, i32
  }
  func.func @transform_7(%arg0: i32) -> (i32, i32) {
    %c0_i32 = arith.constant 0 : i32
    %c0_i32_0 = arith.constant 0 : i32
    %c0_i32_1 = arith.constant 0 : i32
    return %c0_i32, %c0_i32_0 : i32, i32
  }
  func.func @transform_8(%arg0: i32) -> (i32, i32) {
    %c0_i32 = arith.constant 0 : i32
    %c0_i32_0 = arith.constant 0 : i32
    %c0_i32_1 = arith.constant 0 : i32
    return %c0_i32, %c0_i32_0 : i32, i32
  }
  func.func @transform_9(%arg0: i32) -> (i32, i32) {
    %c0_i32 = arith.constant 0 : i32
    %c0_i32_0 = arith.constant 0 : i32
    %c0_i32_1 = arith.constant 0 : i32
    return %c0_i32, %c0_i32_0 : i32, i32
  }
}

</mosaic_0001>

<bundles_post_ra>
// kernel: tpu_custom_call.1
= control target key start
LH: loop header
LB: loop body
LE: loop exit
PB: predicated region body
PF: predicated region fallthrough
CT: control target
= control target key end

     0   :  { %vm38_vm0 = vcmask 261120   ;;  %s1737_s0 = inlined_call_operand.vmem [shape: f32[16,32], index: 0, kind: input, shape index: {}]   ;;  %s1738_s1 = inlined_call_operand.vmem [shape: bf16[32,64], index: 1, kind: input, shape index: {}]   ;;  %s1739_s2 = inlined_call_operand.vmem [shape: bf16[32,32], index: 2, kind: input, shape index: {}]   ;;  %s1740_s3 = inlined_call_operand.vmem [shape: bf16[32,128], index: 3, kind: input, shape index: {}]   ;;  %s1741_s4 = inlined_call_operand.vmem [shape: bf16[64,32], index: 4, kind: input, shape index: {}]   ;;  %s1742_s5 = inlined_call_operand.vmem [shape: f32[8,4], index: 5, kind: input, shape index: {}]   ;;  %s1743_s6 = inlined_call_operand.vmem [shape: f32[8,4], index: 6, kind: input, shape index: {}]   ;;  %s1744_s7 = inlined_call_operand.vmem [shape: f32[8,4], index: 7, kind: input, shape index: {}]   ;;  %s1745_s8 = inlined_call_operand.vmem [shape: f32[8,4], index: 8, kind: input, shape index: {}]   ;;  %s1746_s9 = inlined_call_operand.hbm [shape: f32[16,32], index: 9, kind: output, shape index: {}]  }
   0x1   :  { %v1459_v0 = vld [vmem:[%s1737_s0] sm:$0xff]  ;;  %v1464_v1 = vld [vmem:[%s1737_s0 + $0x8] sm:$0xff] }
   0x2   :  { %v36_v2 = vmul.f32 %v1459_v0, %v1459_v0  ;;  %v37_v3 = vmul.f32 %v1464_v1, %v1464_v1 }
   0x4   :  { %v39_v4 = vsel %vm38_vm0, %v36_v2, 0.0  ;;  %v42_v5 = vsel %vm38_vm0, %v37_v3, 0.0 }
   0x5   :  { %40 = vadd.xlane.f32.xlu0 %v39_v4 }
   0x6   :  { %14 = vsyncpa [#allocation3], 0  ;;  %v1306_v6 = vld [vmem:[%s1738_s1] sm:$0xff]   ;;  %v1388_v7 = vmov 0.0   ;;  %vm1389_vm1 = vmmov 0   ;;  %v1307_v8 = vld [vmem:[%s1738_s1 + $0x8] sm:$0xff]  }
   0x7   :  { %1189 = vmatprep.subr.bf16.mxu0 %v1388_v7  ;;  %1193 = vmatprep.mubr.msk.bf16.mxu0 %vm1389_vm1, %v1388_v7  ;;  %v137_v20 = vld [vmem:[%s1744_s7] sm:$0xff]  ;;  %s1390_s17 = smov 4   ;;  %s1391_s18 = smov 120   ;;  %vm143_vm2 = vcmask 31744   ;;  %vm346_vm3 = vcmask 64512   ;;  %vm646_vm6 = vcmask 1043456  }
   0x8   :  { %1190 = vmatpush3.bf16.msra.mxu0 %v1306_v6  ;;  %1197 = vmatprep.subr.bf16.mxu1 %v1388_v7  ;;  %v138_v25 = vld [vmem:[%s1745_s8] sm:$0xff]  ;;  %s1392_s7 = smov 92   ;;  %s1393_s21 = smov 100   ;;  %vm854_vm7 = vcmask 130048   ;;  %vm856_vm8 = vcmask 195584   ;;  %vm1070_vm9 = vcmask 523264  }
   0x9   :  { %43 = vadd.xlane.f32.xlu0 %v42_v5  ;;  %1191 = vmatprep.subr.bf16.mxu0 %v1388_v7  ;;  %s1394_s8 = smov 32   ;;  %v145_v31 = vsub.f32 0.0, %v138_v25  ;;  %s1395_s22 = smov 112   ;;  %v1529_v49 = vld [vmem:[%s1742_s5] sm:$0xff] }
   0xa   :  { %1199 = vmatprep.mubr.msk.bf16.mxu1 %vm1389_vm1, %v1388_v7  ;;  %v1537_v50 = vld [vmem:[%s1743_s6] sm:$0xff]  ;;  %s1396_s27 = smov 124   ;;  %s1397_s5 = smov 96  }
   0xb   :  { %s1399_s6 = smov 80   ;;  %s1400_s11 = smov 8  }
   0xc   :  { %1192 = vmatpush3.bf16.msra.mxu0 %v1307_v8  ;;  %s1401_s12 = smov 16  }
   0xd   :  { %1203 = vmatprep.subr.bf16.mxu0 %v1388_v7 }
  0x1f   :  { %140 = vrot.lane.b32.xlu0 %v137_v20, %s1390_s17 }
  0x92   :  { %v41_v9 = vpop.xlane.xlu0 %40 }
  0x93   :  { %v46_v10 = vmul.f32 0.03125, %v41_v9 }
  0x95   :  { %v48_v11 = vadd.f32 1e-05, %v46_v10 }
  0x96   :  { %v44_v12 = vpop.xlane.xlu0 %43 }
  0x97   :  { %v47_v13 = vmul.f32 0.03125, %v44_v12  ;;  %1316 = vrsqrt.f32 %v48_v11 }
  0x99   :  { %v49_v14 = vadd.f32 1e-05, %v47_v13 }
  0x9a   :  { %v141_v27 = vpop.permute.xlu0 %140 }
  0x9b   :  { %1318 = vrsqrt.f32 %v49_v14  ;;  %v144_v29 = vsel %vm143_vm2, %v137_v20, %v141_v27 }
  0xa1   :  { %v1317_v15 = vpop.eup %1316 }
  0xa2   :  { %v52_v17 = vmul.f32 %v1317_v15, %v1459_v0 }
  0xa5   :  { %v1319_v16 = vpop.eup %1318 }
  0xa6   :  { %v53_v18 = vmul.f32 %v1319_v16, %v1464_v1 }
  0xa8   :  { %v54_v19 = vpack.c.bf16 %v53_v18, %v52_v17 }
  0xaa   :  { %1194 = vmatmul.mubr.msk.bf16.vlgmr.msra.gmra.mrb[0].mxu0 %vm38_vm0, %v54_v19 }
  0xab   :  { %1205 = vmatprep.mubr.msk.bf16.mxu0 %vm1389_vm1, %v1388_v7 }
 0x17d   :  { %v1495_v21 = vpop.f32.mrb[0].mxu0 }
 0x17e   :  { %116 = vrot.lane.b32.xlu1 %v1495_v21, %s1391_s18  ;;  %v1195_v22 = vpop.f32.mrb[1].mxu0 }
 0x17f   :  { %v1498_v23 = vpop.f32.mrb[2].mxu0 }
 0x180   :  { %v1196_v24 = vpop.f32.mrb[3].mxu0 }
 0x181   :  { %v156_v24 = vsub.f32 0.0, %v1537_v50 }
 0x182   :  { %120 = vrot.lane.b32.xlu1 %v1498_v23, %s1391_s18 }
 0x186   :  { %147 = vrot.lane.b32.xlu1 %v138_v25, %s1390_s17 }
 0x18a   :  { %250 = vrot.lane.b32.xlu1 %v1495_v21, %s1392_s7 }
 0x18e   :  { %262 = vrot.lane.b32.xlu1 %v1495_v21, %s1393_s21 }
 0x192   :  { %252 = vrot.lane.b32.xlu1 %v1498_v23, %s1392_s7 }
 0x196   :  { %264 = vrot.lane.b32.xlu1 %v1498_v23, %s1393_s21 }
 0x1f0   :  { %v1509_v26 = vpop.permute.xlu1 %116 }
 0x1f1   :  { %254 = vrot.lane.b32.xlu1 %v1509_v26, %s1392_s7 }
 0x1f4   :  { %v1512_v28 = vpop.permute.xlu1 %120 }
 0x1f5   :  { %266 = vrot.lane.b32.xlu1 %v1509_v26, %s1393_s21  ;;  %256 = vrot.lane.b32.xlu0 %v1512_v28, %s1392_s7 }
 0x1f8   :  { %v148_v30 = vpop.permute.xlu1 %147 }
 0x1f9   :  { %268 = vrot.lane.b32.xlu0 %v1512_v28, %s1393_s21  ;;  %243 = vrot.lane.b32.xlu1 %v144_v29, %s1394_s8  ;;  %v150_v33 = vsel %vm143_vm2, %v145_v31, %v148_v30  ;;  %s1403_s21 = smov 64  }
 0x1fc   :  { %v251_v32 = vpop.permute.xlu1 %250 }
 0x200   :  { %v263_v34 = vpop.permute.xlu1 %262 }
 0x201   :  { %v274_v35 = vsel %vm143_vm2, %v251_v32, %v263_v34 }
 0x202   :  { %v278_v36 = vmul.f32 %v274_v35, %v150_v33 }
 0x204   :  { %286 = vrot.lane.b32.xlu0 %v278_v36, %s1394_s8  ;;  %v253_v37 = vpop.permute.xlu1 %252 }
 0x208   :  { %v265_v38 = vpop.permute.xlu1 %264 }
 0x209   :  { %v275_v39 = vsel %vm143_vm2, %v253_v37, %v265_v38 }
 0x20a   :  { %v279_v40 = vmul.f32 %v275_v39, %v150_v33 }
 0x20c   :  { %288 = vrot.lane.b32.xlu1 %v279_v40, %s1394_s8 }
 0x263   :  { %v255_v41 = vpop.permute.xlu1 %254 }
 0x267   :  { %v267_v42 = vpop.permute.xlu1 %266  ;;  %v257_v43 = vpop.permute.xlu0 %256 }
 0x268   :  { %v276_v44 = vsel %vm143_vm2, %v255_v41, %v267_v42 }
 0x269   :  { %v280_v45 = vmul.f32 %v276_v44, %v150_v33 }
 0x26b   :  { %290 = vrot.lane.b32.xlu0 %v280_v45, %s1394_s8  ;;  %v269_v46 = vpop.permute.xlu0 %268  ;;  %v244_v51 = vpop.permute.xlu1 %243 }
 0x26c   :  { %v277_v47 = vsel %vm143_vm2, %v257_v43, %v269_v46  ;;  %v246_v57 = vmul.f32 %v244_v51, %v1495_v21  ;;  %v247_v61 = vmul.f32 %v244_v51, %v1498_v23  ;;  %v248_v3 = vmul.f32 %v244_v51, %v1509_v26 }
 0x26d   :  { %v281_v48 = vmul.f32 %v277_v47, %v150_v33  ;;  %v249_v6 = vmul.f32 %v244_v51, %v1512_v28 }
 0x26f   :  { %123 = vrot.lane.b32.xlu0 %v1495_v21, %s1395_s22  ;;  %292 = vrot.lane.b32.xlu1 %v281_v48, %s1394_s8 }
 0x273   :  { %129 = vrot.lane.b32.xlu0 %v1498_v23, %s1395_s22  ;;  %125 = vrot.lane.b32.xlu1 %v1509_v26, %s1395_s22 }
 0x276   :  { %v287_v52 = vpop.permute.xlu0 %286 }
 0x277   :  { %152 = vrot.lane.b32.xlu0 %v1529_v49, %s1390_s17  ;;  %131 = vrot.lane.b32.xlu1 %v1512_v28, %s1395_s22  ;;  %v298_v58 = vadd.f32 %v287_v52, %v246_v57 }
 0x279   :  { %v306_v62 = vpack.c.bf16 %v298_v58, %v298_v58 }
 0x27b   :  { %170 = vrot.lane.b32.xlu0 %v1495_v21, %s1396_s27  ;;  %158 = vrot.lane.b32.xlu1 %v1537_v50, %s1390_s17 }
 0x27e   :  { %v289_v53 = vpop.permute.xlu1 %288 }
 0x27f   :  { %174 = vrot.lane.b32.xlu0 %v1498_v23, %s1396_s27  ;;  %172 = vrot.lane.b32.xlu1 %v1509_v26, %s1396_s27  ;;  %v299_v63 = vadd.f32 %v289_v53, %v247_v61 }
 0x281   :  { %v307_v4 = vpack.c.bf16 %v299_v63, %v299_v63 }
 0x283   :  { %194 = vrot.lane.b32.xlu0 %v1495_v21, %s1390_s17  ;;  %176 = vrot.lane.b32.xlu1 %v1512_v28, %s1396_s27 }
 0x287   :  { %198 = vrot.lane.b32.xlu0 %v1498_v23, %s1390_s17  ;;  %196 = vrot.lane.b32.xlu1 %v1509_v26, %s1390_s17 }
 0x28b   :  { %200 = vrot.lane.b32.xlu1 %v1512_v28, %s1390_s17 }
 0x2dd   :  { %v291_v54 = vpop.permute.xlu0 %290 }
 0x2de   :  { %v300_v5 = vadd.f32 %v291_v54, %v248_v3 }
 0x2e0   :  { %v308_v8 = vpack.c.bf16 %v300_v5, %v300_v5 }
 0x2e1   :  { %v293_v55 = vpop.permute.xlu1 %292  ;;  %v1553_v56 = vpop.permute.xlu0 %123 }
 0x2e2   :  { %178 = vrot.lane.b32.xlu0 %v1553_v56, %s1396_s27  ;;  %v301_v9 = vadd.f32 %v293_v55, %v249_v6 }
 0x2e4   :  { %v309_v10 = vpack.c.bf16 %v301_v9, %v301_v9 }
 0x2e5   :  { %v1557_v59 = vpop.permute.xlu1 %125  ;;  %v1559_v60 = vpop.permute.xlu0 %129 }
 0x2e6   :  { %180 = vrot.lane.b32.xlu1 %v1557_v59, %s1396_s27  ;;  %182 = vrot.lane.b32.xlu0 %v1559_v60, %s1396_s27 }
 0x2e9   :  { %v1564_v2 = vpop.permute.xlu1 %131  ;;  %v153_v11 = vpop.permute.xlu0 %152 }
 0x2ea   :  { %184 = vrot.lane.b32.xlu1 %v1564_v2, %s1396_s27  ;;  %344 = vrot.lane.b32.xlu0 %v306_v62, %s1397_s5  ;;  %v155_v30 = vsel %vm143_vm2, %v1529_v49, %v153_v11 }
 0x2eb   :  { %v163_v38 = vmul.f32 %v155_v30, %v1509_v26  ;;  %v162_v41 = vmul.f32 %v155_v30, %v1495_v21  ;;  %v165_v44 = vmul.f32 %v155_v30, %v1512_v28  ;;  %v164_v52 = vmul.f32 %v155_v30, %v1498_v23 }
 0x2ec   :  { %v166_v63 = vmul.f32 %v155_v30, %v1553_v56  ;;  %v167_v3 = vmul.f32 %v155_v30, %v1557_v59 }
 0x2ed   :  { %v159_v12 = vpop.permute.xlu1 %158  ;;  %v171_v13 = vpop.permute.xlu0 %170 }
 0x2ee   :  { %395 = vrot.lane.b32.xlu1 %v307_v4, %s1397_s5  ;;  %202 = vrot.lane.b32.xlu0 %v1553_v56, %s1390_s17  ;;  %v161_v31 = vsel %vm143_vm2, %v156_v24, %v159_v12 }
 0x2f1   :  { %v173_v14 = vpop.permute.xlu1 %172  ;;  %v175_v15 = vpop.permute.xlu0 %174 }
 0x2f2   :  { %204 = vrot.lane.b32.xlu1 %v1557_v59, %s1390_s17  ;;  %445 = vrot.lane.b32.xlu0 %v308_v8, %s1397_s5 }
 0x2f5   :  { %v177_v16 = vpop.permute.xlu1 %176  ;;  %v195_v17 = vpop.permute.xlu0 %194 }
 0x2f6   :  { %495 = vrot.lane.b32.xlu1 %v309_v10, %s1397_s5  ;;  %206 = vrot.lane.b32.xlu0 %v1559_v60, %s1390_s17  ;;  %v218_v32 = vsel %vm143_vm2, %v171_v13, %v195_v17 }
 0x2f7   :  { %v226_v37 = vmul.f32 %v218_v32, %v161_v31 }
 0x2f9   :  { %v197_v18 = vpop.permute.xlu1 %196  ;;  %v199_v19 = vpop.permute.xlu0 %198  ;;  %v234_v47 = vadd.f32 %v226_v37, %v162_v41 }
 0x2fa   :  { %208 = vrot.lane.b32.xlu1 %v1564_v2, %s1390_s17  ;;  %v219_v25 = vsel %vm143_vm2, %v173_v14, %v197_v18  ;;  %v220_v40 = vsel %vm143_vm2, %v175_v15, %v199_v19  ;;  %v168_v15 = vmul.f32 %v155_v30, %v1559_v60 }
 0x2fb   :  { %v227_v33 = vmul.f32 %v219_v25, %v161_v31  ;;  %v228_v48 = vmul.f32 %v220_v40, %v161_v31 }
 0x2fd   :  { %v201_v20 = vpop.permute.xlu1 %200  ;;  %v235_v42 = vadd.f32 %v227_v33, %v163_v38  ;;  %v236_v58 = vadd.f32 %v228_v48, %v164_v52 }
 0x2fe   :  { %v221_v34 = vsel %vm143_vm2, %v177_v16, %v201_v20  ;;  %v169_v16 = vmul.f32 %v155_v30, %v1564_v2  ;;  %v1398_v2 = vmov -1e+30  }
 0x2ff   :  { %v229_v43 = vmul.f32 %v221_v34, %v161_v31  ;;  %v302_v51 = vpack.c.bf16 %v235_v42, %v234_v47 }
 0x301   :  { %v237_v53 = vadd.f32 %v229_v43, %v165_v44 }
 0x303   :  { %v303_v5 = vpack.c.bf16 %v237_v53, %v236_v58 }
 0x354   :  { %v179_v22 = vpop.permute.xlu0 %178 }
 0x358   :  { %v181_v27 = vpop.permute.xlu1 %180  ;;  %v183_v29 = vpop.permute.xlu0 %182 }
 0x35c   :  { %v185_v35 = vpop.permute.xlu1 %184  ;;  %v345_v36 = vpop.permute.xlu0 %344 }
 0x35d   :  { %v351_v39 = vsel %vm346_vm3, %v345_v36, 0 }
 0x35e   :  { %1198 = vmatpush3.bf16.xpose.msra.mxu1 %v351_v39 }
 0x35f   :  { %1209 = vmatprep.subr.bf16.mxu1 %v1388_v7 }
 0x360   :  { %v396_v45 = vpop.permute.xlu1 %395  ;;  %v203_v46 = vpop.permute.xlu0 %202 }
 0x361   :  { %v401_v49 = vsel %vm346_vm3, %v396_v45, 0  ;;  %v222_v50 = vsel %vm143_vm2, %v179_v22, %v203_v46  ;;  %v310_v22 = vlaneseq }
 0x362   :  { %1204 = vmatpush3.bf16.xpose.msra.mxu0 %v401_v49  ;;  %v230_v54 = vmul.f32 %v222_v50, %v161_v31 }
 0x363   :  { %1215 = vmatprep.subr.bf16.mxu0 %v1388_v7  ;;  %v311_v24 = vshrl.u32 %v310_v22, 7 }
 0x364   :  { %v205_v55 = vpop.permute.xlu1 %204  ;;  %v446_v57 = vpop.permute.xlu0 %445  ;;  %v238_v6 = vadd.f32 %v230_v54, %v166_v63 }
 0x365   :  { %v223_v61 = vsel %vm143_vm2, %v181_v27, %v205_v55  ;;  %v451_v62 = vsel %vm346_vm3, %v446_v57, 0  ;;  %1200 = vmatmul.mubr.msk.bf16.vlgmr.msra.gmra.mrb[0].mxu1 %vm346_vm3, %v302_v51  ;;  %v312_v25 = vadd.s32 8, %v311_v24  ;;  %v314_v27 = vand.u32 127, %v310_v22 }
 0x366   :  { %v231_v4 = vmul.f32 %v223_v61, %v161_v31  ;;  %1210 = vmatpush3.bf16.xpose.msra.mxu1 %v451_v62  ;;  %1211 = vmatprep.mubr.msk.bf16.mxu1 %vm1389_vm1, %v1388_v7 }
 0x367   :  { %1221 = vmatprep.subr.bf16.mxu1 %v1388_v7  ;;  %v326_v60 = vand.u32 7, %v312_v25 }
 0x368   :  { %v239_v8 = vadd.f32 %v231_v4, %v167_v3  ;;  %v496_v9 = vpop.permute.xlu1 %495  ;;  %v207_v10 = vpop.permute.xlu0 %206 }
 0x369   :  { %v501_v11 = vsel %vm346_vm3, %v496_v9, 0  ;;  %v224_v12 = vsel %vm143_vm2, %v183_v29, %v207_v10  ;;  %1206 = vmatmul.mubr.msk.bf16.vlgmr.msra.gmra.mrb[4].mxu0 %vm346_vm3, %v303_v5  ;;  %v319_v29 = vand.u32 7, %v311_v24  ;;  %vm340_vm5 = vcmp.ge.s32.totalorder %v326_v60, %v314_v27 }
 0x36a   :  { %v304_v56 = vpack.c.bf16 %v239_v8, %v238_v6  ;;  %1216 = vmatpush3.bf16.xpose.msra.mxu0 %v501_v11  ;;  %1217 = vmatprep.mubr.msk.bf16.mxu0 %vm1389_vm1, %v1388_v7  ;;  %v232_v59 = vmul.f32 %v224_v12, %v161_v31  ;;  %v342_v32 = vsel %vm340_vm5, 0.0, %v1398_v2  ;;  %v636_v6 = vpack.c.bf16 %v1495_v21, %v1495_v21 }
 0x36b   :  { %1227 = vmatprep.subr.bf16.mxu0 %v1388_v7  ;;  %vm339_vm4 = vcmp.ge.s32.totalorder %v319_v29, %v314_v27 }
 0x36c   :  { %v209_v13 = vpop.permute.xlu1 %208  ;;  %v240_v18 = vadd.f32 %v232_v59, %v168_v15  ;;  %v341_v30 = vsel %vm339_vm4, 0.0, %v1398_v2 }
 0x36d   :  { %v225_v14 = vsel %vm143_vm2, %v185_v35, %v209_v13  ;;  %1212 = vmatmul.mubr.msk.bf16.vlgmr.msra.gmra.mrb[4].mxu1 %vm346_vm3, %v304_v56 }
 0x36e   :  { %v233_v17 = vmul.f32 %v225_v14, %v161_v31  ;;  %1223 = vmatprep.mubr.msk.bf16.mxu1 %vm1389_vm1, %v1388_v7 }
 0x370   :  { %v241_v19 = vadd.f32 %v233_v17, %v169_v16 }
 0x372   :  { %v305_v20 = vpack.c.bf16 %v241_v19, %v240_v18 }
 0x374   :  { %1218 = vmatmul.mubr.msk.bf16.vlgmr.msra.gmra.mrb[8].mxu0 %vm346_vm3, %v305_v20 }
 0x375   :  { %1229 = vmatprep.mubr.msk.bf16.mxu0 %vm1389_vm1, %v1388_v7 }
 0x438   :  { %v387_v31 = vpop.f32.mrb[0].mxu1 }
 0x439   :  { %v388_v33 = vadd.f32 %v387_v31, %v341_v30  ;;  %v1201_v34 = vpop.f32.mrb[1].mxu1 }
 0x43a   :  { %v390_v35 = vpop.f32.mrb[2].mxu1 }
 0x43b   :  { %v391_v36 = vadd.f32 %v390_v35, %v342_v32  ;;  %v1202_v37 = vpop.f32.mrb[3].mxu1  ;;  %v544_v38 = vsel %vm346_vm3, %v388_v33, -inf }
 0x43c   :  { %v437_v39 = vpop.f32.mrb[4].mxu0  ;;  %545 = vmax.xlane.f32.xlu0 %v544_v38 }
 0x43d   :  { %v438_v40 = vadd.f32 %v437_v39, %v341_v30  ;;  %v1207_v41 = vpop.f32.mrb[5].mxu0  ;;  %v547_v42 = vsel %vm346_vm3, %v391_v36, -inf }
 0x43e   :  { %v440_v43 = vpop.f32.mrb[6].mxu0  ;;  %548 = vmax.xlane.f32.xlu1 %v547_v42 }
 0x43f   :  { %v441_v44 = vadd.f32 %v440_v43, %v342_v32  ;;  %v1208_v45 = vpop.f32.mrb[7].mxu0  ;;  %v550_v46 = vsel %vm346_vm3, %v438_v40, -inf }
 0x440   :  { %551 = vmax.xlane.f32.xlu0 %v550_v46  ;;  %v487_v47 = vpop.f32.mrb[4].mxu1 }
 0x441   :  { %v488_v48 = vadd.f32 %v487_v47, %v341_v30  ;;  %v1213_v49 = vpop.f32.mrb[5].mxu1  ;;  %v553_v53 = vsel %vm346_vm3, %v441_v44, -inf }
 0x442   :  { %v490_v50 = vpop.f32.mrb[6].mxu1  ;;  %v638_v49 = vpack.c.bf16 %v1509_v26, %v1509_v26 }
 0x443   :  { %v491_v51 = vadd.f32 %v490_v50, %v342_v32  ;;  %v1214_v52 = vpop.f32.mrb[7].mxu1  ;;  %v556_v54 = vsel %vm346_vm3, %v488_v48, -inf  ;;  %v639_v50 = vpack.c.bf16 %v1512_v28, %v1512_v28 }
 0x444   :  { %554 = vmax.xlane.f32.xlu0 %v553_v53  ;;  %557 = vmax.xlane.f32.xlu1 %v556_v54 }
 0x445   :  { %v559_v57 = vsel %vm346_vm3, %v491_v51, -inf }
 0x447   :  { %v537_v55 = vpop.f32.mrb[8].mxu0 }
 0x448   :  { %v538_v58 = vadd.f32 %v537_v55, %v341_v30  ;;  %560 = vmax.xlane.f32.xlu0 %v559_v57  ;;  %v1219_v61 = vpop.f32.mrb[9].mxu0 }
 0x449   :  { %v540_v62 = vpop.f32.mrb[10].mxu0 }
 0x44a   :  { %v541_v63 = vadd.f32 %v540_v62, %v342_v32  ;;  %v1220_v3 = vpop.f32.mrb[11].mxu0  ;;  %v562_v4 = vsel %vm346_vm3, %v538_v58, -inf }
 0x44b   :  { %563 = vmax.xlane.f32.xlu1 %v562_v4 }
 0x44c   :  { %v565_v5 = vsel %vm346_vm3, %v541_v63, -inf }
 0x44d   :  { %566 = vmax.xlane.f32.xlu0 %v565_v5 }
 0x45c   :  { %641 = vrot.lane.b32.xlu1 %v636_v6, %s1399_s6 }
 0x4c9   :  { %v546_v8 = vpop.xlane.xlu0 %545 }
 0x4ca   :  { %v568_v9 = vsub.f32 %v388_v33, %v546_v8 }
 0x4cb   :  { %v549_v10 = vpop.xlane.xlu1 %548 }
 0x4cc   :  { %v576_v11 = vmul.f32 1.442695, %v568_v9  ;;  %v569_v12 = vsub.f32 %v391_v36, %v549_v10 }
 0x4cd   :  { %v552_v56 = vpop.xlane.xlu0 %551 }
 0x4ce   :  { %1320 = vpow2.f32 %v576_v11  ;;  %v578_v59 = vmul.f32 1.442695, %v569_v12  ;;  %v570_v13 = vsub.f32 %v438_v40, %v552_v56 }
 0x4d0   :  { %1322 = vpow2.f32 %v578_v59  ;;  %v580_v14 = vmul.f32 1.442695, %v570_v13 }
 0x4d1   :  { %v558_v15 = vpop.xlane.xlu1 %557  ;;  %v555_v16 = vpop.xlane.xlu0 %554 }
 0x4d2   :  { %1324 = vpow2.f32 %v580_v14  ;;  %v572_v17 = vsub.f32 %v488_v48, %v558_v15  ;;  %v571_v18 = vsub.f32 %v441_v44, %v555_v16 }
 0x4d4   :  { %v584_v21 = vmul.f32 1.442695, %v572_v17  ;;  %v582_v19 = vmul.f32 1.442695, %v571_v18 }
 0x4d5   :  { %v561_v20 = vpop.xlane.xlu0 %560 }
 0x4d6   :  { %1326 = vpow2.f32 %v584_v21  ;;  %v573_v22 = vsub.f32 %v491_v51, %v561_v20  ;;  %v637_v51 = vpack.c.bf16 %v1498_v23, %v1498_v23 }
 0x4d7   :  { %1328 = vpow2.f32 %v582_v19 }
 0x4d8   :  { %v1321_v24 = vpop.eup %1320  ;;  %v586_v25 = vmul.f32 1.442695, %v573_v22  ;;  %v564_v27 = vpop.xlane.xlu1 %563 }
 0x4d9   :  { %v574_v29 = vsub.f32 %v538_v58, %v564_v27  ;;  %v592_v60 = vsel %vm346_vm3, %v1321_v24, 0.0 }
 0x4da   :  { %v1323_v2 = vpop.eup %1322  ;;  %1330 = vpow2.f32 %v586_v25  ;;  %593 = vadd.xlane.f32.xlu1 %v592_v60  ;;  %v567_v30 = vpop.xlane.xlu0 %566 }
 0x4db   :  { %v588_v31 = vmul.f32 1.442695, %v574_v29  ;;  %v575_v32 = vsub.f32 %v541_v63, %v567_v30  ;;  %v595_v33 = vsel %vm346_vm3, %v1323_v2, 0.0 }
 0x4dc   :  { %v1630_v34 = vpop.eup %1324  ;;  %v642_v35 = vpop.permute.xlu1 %641  ;;  %596 = vadd.xlane.f32.xlu0 %v595_v33 }
 0x4dd   :  { %1332 = vpow2.f32 %v588_v31  ;;  %v590_v36 = vmul.f32 1.442695, %v575_v32  ;;  %v648_v37 = vsel %vm646_vm6, %v642_v35, 0  ;;  %v598_v38 = vsel %vm346_vm3, %v1630_v34, 0.0  ;;  %v1309_v32 = vld [vmem:[%s1739_s2 + $0x8] sm:$0xff]  }
 0x4de   :  { %1222 = vmatpush3.bf16.msra.mxu1 %v648_v37  ;;  %599 = vadd.xlane.f32.xlu1 %v598_v38 }
 0x4df   :  { %1334 = vpow2.f32 %v590_v36  ;;  %1233 = vmatprep.subr.bf16.mxu1 %v1388_v7 }
 0x4e0   :  { %v1327_v39 = vpop.eup %1326 }
 0x4e1   :  { %v1329_v40 = vpop.eup %1328  ;;  %v604_v41 = vsel %vm346_vm3, %v1327_v39, 0.0 }
 0x4e2   :  { %605 = vadd.xlane.f32.xlu1 %v604_v41  ;;  %v601_v42 = vsel %vm346_vm3, %v1329_v40, 0.0 }
 0x4e3   :  { %602 = vadd.xlane.f32.xlu0 %v601_v42 }
 0x4e4   :  { %v1331_v43 = vpop.eup %1330 }
 0x4e5   :  { %v607_v44 = vsel %vm346_vm3, %v1331_v43, 0.0 }
 0x4e7   :  { %v1333_v45 = vpop.eup %1332  ;;  %608 = vadd.xlane.f32.xlu0 %v607_v44 }
 0x4e8   :  { %v610_v46 = vsel %vm346_vm3, %v1333_v45, 0.0 }
 0x4e9   :  { %v1335_v47 = vpop.eup %1334  ;;  %611 = vadd.xlane.f32.xlu1 %v610_v46 }
 0x4ea   :  { %v613_v48 = vsel %vm346_vm3, %v1335_v47, 0.0 }
 0x4eb   :  { %614 = vadd.xlane.f32.xlu0 %v613_v48 }
 0x4fa   :  { %742 = vrot.lane.b32.xlu1 %v638_v49, %s1399_s6 }
 0x4fe   :  { %792 = vrot.lane.b32.xlu1 %v639_v50, %s1399_s6 }
 0x501   :  { %692 = vrot.lane.b32.xlu0 %v637_v51, %s1399_s6 }
 0x567   :  { %v594_v52 = vpop.xlane.xlu1 %593 }
 0x568   :  { %1336 = vrcp.f32 %v594_v52 }
 0x569   :  { %v597_v53 = vpop.xlane.xlu0 %596 }
 0x56a   :  { %1338 = vrcp.f32 %v597_v53 }
 0x56b   :  { %v600_v54 = vpop.xlane.xlu1 %599 }
 0x56c   :  { %1340 = vrcp.f32 %v600_v54 }
 0x56f   :  { %v606_v55 = vpop.xlane.xlu1 %605 }
 0x570   :  { %v603_v26 = vpop.xlane.xlu0 %602 }
 0x571   :  { %1342 = vrcp.f32 %v603_v26 }
 0x572   :  { %v1337_v57 = vpop.eup %1336  ;;  %1344 = vrcp.f32 %v606_v55 }
 0x573   :  { %v624_v61 = vmul.f32 %v1337_v57, %v1321_v24 }
 0x574   :  { %v1339_v58 = vpop.eup %1338  ;;  %v609_v28 = vpop.xlane.xlu0 %608 }
 0x575   :  { %v625_v62 = vmul.f32 %v1339_v58, %v1323_v2  ;;  %1346 = vrcp.f32 %v609_v28  ;;  %v1308_v2 = vld [vmem:[%s1739_s2] sm:$0xff]   ;;  %s1402_s2 = smov 24  }
 0x576   :  { %v612_v63 = vpop.xlane.xlu1 %611  ;;  %v1341_v4 = vpop.eup %1340 }
 0x577   :  { %1348 = vrcp.f32 %v612_v63  ;;  %v632_v23 = vpack.c.bf16 %v625_v62, %v624_v61  ;;  %v626_v12 = vmul.f32 %v1341_v4, %v1630_v34 }
 0x578   :  { %v615_v3 = vpop.xlane.xlu0 %614 }
 0x579   :  { %1350 = vrcp.f32 %v615_v3  ;;  %1224 = vmatmul.mubr.msk.bf16.vlgmr.msra.gmra.mrb[8].mxu1 %vm346_vm3, %v632_v23 }
 0x57a   :  { %v743_v5 = vpop.permute.xlu1 %742  ;;  %1235 = vmatprep.mubr.msk.bf16.mxu1 %vm1389_vm1, %v1388_v7 }
 0x57b   :  { %v1343_v6 = vpop.eup %1342  ;;  %v748_v8 = vsel %vm646_vm6, %v743_v5, 0 }
 0x57c   :  { %v627_v9 = vmul.f32 %v1343_v6, %v1329_v40  ;;  %1234 = vmatpush3.bf16.msra.mxu1 %v748_v8  ;;  %v693_v10 = vpop.permute.xlu0 %692  ;;  %v1345_v11 = vpop.eup %1344 }
 0x57d   :  { %v698_v56 = vsel %vm646_vm6, %v693_v10, 0  ;;  %1245 = vmatprep.subr.bf16.mxu1 %v1388_v7  ;;  %v628_v15 = vmul.f32 %v1345_v11, %v1327_v39 }
 0x57e   :  { %v793_v59 = vpop.permute.xlu1 %792  ;;  %1228 = vmatpush3.bf16.msra.mxu0 %v698_v56  ;;  %v633_v14 = vpack.c.bf16 %v627_v9, %v626_v12 }
 0x57f   :  { %v1347_v13 = vpop.eup %1346  ;;  %1239 = vmatprep.subr.bf16.mxu0 %v1388_v7  ;;  %v798_v18 = vsel %vm646_vm6, %v793_v59, 0 }
 0x580   :  { %v629_v16 = vmul.f32 %v1347_v13, %v1331_v43 }
 0x581   :  { %v1349_v17 = vpop.eup %1348  ;;  %1230 = vmatmul.mubr.msk.bf16.vlgmr.msra.gmra.mrb[12].mxu0 %vm346_vm3, %v633_v14 }
 0x582   :  { %1240 = vmatpush3.bf16.msra.mxu0 %v798_v18  ;;  %v634_v21 = vpack.c.bf16 %v629_v16, %v628_v15  ;;  %1241 = vmatprep.mubr.msk.bf16.mxu0 %vm1389_vm1, %v1388_v7  ;;  %v630_v20 = vmul.f32 %v1349_v17, %v1333_v45 }
 0x583   :  { %v1351_v19 = vpop.eup %1350  ;;  %1253 = vmatprep.subr.bf16.mxu0 %v1388_v7 }
 0x584   :  { %v631_v22 = vmul.f32 %v1351_v19, %v1335_v47  ;;  %1236 = vmatmul.mubr.msk.bf16.vlgmr.msra.gmra.mrb[12].mxu1 %vm346_vm3, %v634_v21 }
 0x585   :  { %1249 = vmatprep.mubr.msk.bf16.mxu1 %vm1389_vm1, %v1388_v7  ;;  %1246 = vmatpush3.bf16.msra.mxu1 %v1308_v2 }
 0x586   :  { %v635_v24 = vpack.c.bf16 %v631_v22, %v630_v20  ;;  %1247 = vmatprep.subr.bf16.mxu1 %v1388_v7  ;;  %v1312_v20 = vld [vmem:[%s1741_s4] sm:$0xff]   ;;  %v1313_v22 = vld [vmem:[%s1741_s4 + $0x8] sm:$0xff]  }
 0x589   :  { %1242 = vmatmul.mubr.msk.bf16.vlgmr.msra.gmra.mrb[16].mxu0 %vm346_vm3, %v635_v24  ;;  %1248 = vmatpush3.bf16.msra.mxu1 %v1309_v32  ;;  %v1314_v24 = vld [vmem:[%s1741_s4 + $0x10] sm:$0xff]  }
 0x58a   :  { %1257 = vmatprep.mubr.msk.bf16.mxu0 %vm1389_vm1, %v1388_v7  ;;  %1261 = vmatprep.subr.bf16.mxu1 %v1388_v7 }
 0x64c   :  { %v684_v25 = vpop.f32.mrb[8].mxu1 }
 0x64d   :  { %v1225_v27 = vpop.f32.mrb[9].mxu1 }
 0x64e   :  { %v687_v29 = vpop.f32.mrb[10].mxu1 }
 0x64f   :  { %v1226_v60 = vpop.f32.mrb[11].mxu1 }
 0x654   :  { %v734_v30 = vpop.f32.mrb[12].mxu0 }
 0x655   :  { %v1231_v31 = vpop.f32.mrb[13].mxu0 }
 0x656   :  { %v737_v33 = vpop.f32.mrb[14].mxu0 }
 0x657   :  { %v1291_v34 = vpack.i.bf16 %v737_v33, %v687_v29  ;;  %v784_v35 = vpop.f32.mrb[12].mxu1  ;;  %v1232_v36 = vpop.f32.mrb[15].mxu0 }
 0x658   :  { %v1237_v37 = vpop.f32.mrb[13].mxu1 }
 0x659   :  { %v787_v38 = vpop.f32.mrb[14].mxu1  ;;  %1292 = vrot.lane.b32.xlu0 %v1291_v34, %s1400_s11 }
 0x65a   :  { %v1238_v39 = vpop.f32.mrb[15].mxu1 }
 0x65c   :  { %v834_v40 = vpop.f32.mrb[16].mxu0 }
 0x65d   :  { %v1296_v41 = vpack.i.bf16 %v834_v40, %v784_v35  ;;  %v1243_v42 = vpop.f32.mrb[17].mxu0 }
 0x65e   :  { %v837_v43 = vpop.f32.mrb[18].mxu0 }
 0x65f   :  { %v1301_v44 = vpack.i.bf16 %v837_v43, %v787_v38  ;;  %1297 = vrot.lane.b32.xlu1 %v1296_v41, %s1401_s12  ;;  %v1244_v45 = vpop.f32.mrb[19].mxu0 }
 0x661   :  { %1302 = vrot.lane.b32.xlu0 %v1301_v44, %s1402_s2 }
 0x6cb   :  { %v1293_v46 = vpop.permute.xlu0 %1292 }
 0x6cc   :  { %v1295_v47 = vunpack.i.h.bf16 %v1293_v46  ;;  %v1294_v48 = vunpack.i.l.bf16 %v1293_v46 }
 0x6ce   :  { %v870_v52 = vsel %vm346_vm3, %v734_v30, %v1295_v47  ;;  %v853_v53 = vsel %vm346_vm3, %v684_v25, %v1294_v48  ;;  %v1315_v25 = vld [vmem:[%s1741_s4 + $0x18] sm:$0xff]   ;;  %s1404_s4 = smov [#allocation2]  }
 0x6cf   :  { %s1124_s8 = sshll.u32 %s1404_s4, 4  ;;  %s1125_s8 = int_to_ptr.vmem [resolvable:$true] %s1124_s8 }
 0x6d0   :  { %s1364_s22 = scalar_lea.vmem %s1125_s8, 256  ;;  %p1369_p1 = scmp.lt.s32.totalorder %s1125_s8, %s1125_s8 }
 0x6d1   :  { %v1298_v49 = vpop.permute.xlu1 %1297  ;;  %p1365_p0 = scmp.ne.s32.totalorder %s1125_s8, %s1364_s22  ;;  %p1370_p2 = scmp.lt.s32.totalorder %s1364_s22, %s1364_s22 }
 0x6d2   :  { %v1300_v50 = vunpack.i.h.bf16 %v1298_v49  ;;  %v1299_v51 = vunpack.i.l.bf16 %v1298_v49 }
 0x6d3   :  { %v1303_v54 = vpop.permute.xlu0 %1302  ;;  %p1371_p3 = por %p1370_p2, %p1369_p1 }
 0x6d4   :  { %v871_v55 = vsel %vm854_vm7, %v870_v52, %v1300_v50  ;;  %v855_v26 = vsel %vm854_vm7, %v853_v53, %v1299_v51  ;;  %v1305_v57 = vunpack.i.h.bf16 %v1303_v54  ;;  %v1304_v58 = vunpack.i.l.bf16 %v1303_v54 }
 0x6d5   :  { %p1372_p4 = pnand %p1371_p3, %p1365_p0 }
 0x6d6   :  { %v872_v28 = vsel %vm856_vm8, %v871_v55, %v1305_v57  ;;  %v857_v61 = vsel %vm856_vm8, %v855_v26, %v1304_v58 }
 0x6d7   :  { %v873_v62 = vpack.c.bf16 %v872_v28, %v857_v61 }
 0x6d9   :  { %1250 = vmatmul.mubr.msk.bf16.vlgmr.msra.gmra.mrb[16].mxu1 %vm38_vm0, %v873_v62 }
 0x6da   :  { %1269 = vmatprep.mubr.msk.bf16.mxu1 %vm1389_vm1, %v1388_v7  ;;  %1262 = vmatpush3.bf16.msra.mxu1 %v1312_v20 }
 0x6db   :  { %1263 = vmatprep.subr.bf16.mxu1 %v1388_v7 }
 0x6de   :  { %1264 = vmatpush3.bf16.msra.mxu1 %v1313_v22 }
 0x6df   :  { %1265 = vmatprep.subr.bf16.mxu1 %v1388_v7 }
 0x6e2   :  { %1266 = vmatpush3.bf16.msra.mxu1 %v1314_v24 }
 0x6e3   :  { %1267 = vmatprep.subr.bf16.mxu1 %v1388_v7 }
 0x6e6   :  { %1268 = vmatpush3.bf16.msra.mxu1 %v1315_v25 }
 0x7ac   :  { %v927_v63 = vpop.f32.mrb[16].mxu1 }
 0x7ad   :  { %v1684_v23 = vadd.f32 %v927_v63, %v1459_v0  ;;  %v1251_v3 = vpop.f32.mrb[17].mxu1  ;;  %v1310_v0 = vld [vmem:[%s1740_s3] sm:$0xff]  }
 0x7ae   :  { %v930_v4 = vpop.f32.mrb[18].mxu1  ;;  %1254 = vmatpush3.bf16.msra.mxu0 %v1310_v0 }
 0x7af   :  { %v1687_v5 = vadd.f32 %v930_v4, %v1464_v1  ;;  %v1252_v6 = vpop.f32.mrb[19].mxu1  ;;  %v936_v8 = vmul.f32 %v1684_v23, %v1684_v23  ;;  %1255 = vmatprep.subr.bf16.mxu0 %v1388_v7  ;;  %v1311_v1 = vld [vmem:[%s1740_s3 + $0x8] sm:$0xff]  }
 0x7b1   :  { %v938_v9 = vsel %vm38_vm0, %v936_v8, 0.0  ;;  %v937_v10 = vmul.f32 %v1687_v5, %v1687_v5 }
 0x7b2   :  { %939 = vadd.xlane.f32.xlu1 %v938_v9  ;;  %1256 = vmatpush3.bf16.msra.mxu0 %v1311_v1 }
 0x7b3   :  { %v941_v11 = vsel %vm38_vm0, %v937_v10, 0.0 }
 0x7b4   :  { %942 = vadd.xlane.f32.xlu0 %v941_v11 }
 0x83f   :  { %v940_v12 = vpop.xlane.xlu1 %939 }
 0x840   :  { %v944_v56 = vmul.f32 0.03125, %v940_v12 }
 0x841   :  { %v943_v59 = vpop.xlane.xlu0 %942 }
 0x842   :  { %v946_v13 = vadd.f32 1e-05, %v944_v56  ;;  %v945_v14 = vmul.f32 0.03125, %v943_v59 }
 0x844   :  { %1352 = vrsqrt.f32 %v946_v13  ;;  %v947_v15 = vadd.f32 1e-05, %v945_v14 }
 0x846   :  { %1354 = vrsqrt.f32 %v947_v15 }
 0x84e   :  { %v1353_v16 = vpop.eup %1352 }
 0x84f   :  { %v950_v18 = vmul.f32 %v1353_v16, %v1684_v23 }
 0x850   :  { %v1355_v17 = vpop.eup %1354 }
 0x851   :  { %v951_v21 = vmul.f32 %v1355_v17, %v1687_v5 }
 0x853   :  { %v952_v19 = vpack.c.bf16 %v951_v21, %v950_v18 }
 0x855   :  { %1258 = vmatmul.mubr.msk.bf16.vlgmr.msra.gmra.mrb[20].mxu0 %vm38_vm0, %v952_v19 }
 0x928   :  { %v1006_v27 = vpop.f32.mrb[20].mxu0 }
 0x929   :  { %1029 = vrot.lane.b32.xlu0 %v1006_v27, %s1403_s21  ;;  %v1259_v29 = vpop.f32.mrb[21].mxu0  ;;  %v1152_v30 = vmul.f32 -1.442695, %v1006_v27 }
 0x92a   :  { %v1009_v60 = vpop.f32.mrb[22].mxu0 }
 0x92b   :  { %1031 = vrot.lane.b32.xlu1 %v1009_v60, %s1403_s21  ;;  %v1260_v2 = vpop.f32.mrb[23].mxu0  ;;  %v1153_v31 = vmul.f32 -1.442695, %v1009_v60  ;;  %1356 = vpow2.f32 %v1152_v30 }
 0x92d   :  { %1358 = vpow2.f32 %v1153_v31 }
 0x935   :  { %v1357_v32 = vpop.eup %1356 }
 0x936   :  { %v1019_v34 = vadd.f32 1.0, %v1357_v32 }
 0x937   :  { %v1359_v33 = vpop.eup %1358 }
 0x938   :  { %v1020_v7 = vadd.f32 1.0, %v1359_v33  ;;  %1360 = vrcp.f32 %v1019_v34 }
 0x93a   :  { %1362 = vrcp.f32 %v1020_v7 }
 0x942   :  { %v1361_v35 = vpop.eup %1360 }
 0x943   :  { %v1025_v38 = vmul.f32 %v1361_v35, %v1006_v27 }
 0x944   :  { %v1363_v36 = vpop.eup %1362 }
 0x945   :  { %v1026_v39 = vmul.f32 %v1363_v36, %v1009_v60 }
 0x99b   :  { %v1030_v37 = vpop.permute.xlu0 %1029 }
 0x99c   :  { %v1035_v41 = vmul.f32 %v1030_v37, %v1025_v38 }
 0x99d   :  { %v1032_v40 = vpop.permute.xlu1 %1031 }
 0x99e   :  { %v1036_v42 = vmul.f32 %v1032_v40, %v1026_v39 }
 0x9a0   :  { %v1037_v43 = vpack.c.bf16 %v1036_v42, %v1035_v41 }
 0x9a2   :  { %1270 = vmatmul.mubr.msk.bf16.vlgmr.msra.gmra.mrb[20].mxu1 %vm1070_vm9, %v1037_v43 }
 0xa75   :  { %v1108_v44 = vpop.f32.mrb[20].mxu1 }
 0xa76   :  { %v1115_v45 = vadd.f32 %v1108_v44, %v1684_v23  ;;  %v1271_v46 = vpop.f32.mrb[21].mxu1 }
 0xa77   :  { %v1111_v47 = vpop.f32.mrb[22].mxu1 }
 0xa78   :  { %1117 = vst.msk [vmem:[#allocation2] sm:$0xff] %vm38_vm0, %v1115_v45  ;;  %v1116_v48 = vadd.f32 %v1111_v47, %v1687_v5  ;;  %v1272_v49 = vpop.f32.mrb[23].mxu1 }
 0xa7a   :  { %1118 = vst.msk [vmem:[#allocation2 + $0x8] sm:$0xff] %vm38_vm0, %v1116_v48 }
 0xa7b   :  { %1375 = shalt.err (!%p1372_p4)
}
 0xa7c   :  { %s1376_s25 = scalar_lea.hbm %s1746_s9, 256 }
 0xa7d   :  { %p1377_p5 = scmp.ne.s32.totalorder %s1746_s9, %s1376_s25  ;;  %p1380_p6 = scmp.lt.u32.totalorder %s1376_s25, %s1746_s9 }
 0xa7f   :  { %p1382_p7 = pnand %p1380_p6, %p1377_p5 }
 0xa81   :  { %1385 = shalt.err (!%p1382_p7)
}
 0xa82   :  { %s1405_s28 = smov 128  }
 0xa83   :  { %1130 = dma.vmem_to_hbm [thread:$0]  %s1125_s8, 256, %s1746_s9, [#allocation3], %s1405_s28, %s1405_s28, %s1400_s11  }
 0xa84   :  { %1386 = dma.done.wait [#allocation3], 256  }
 0xa85   :  { %1387 = vsyncadd [#allocation3], 4294967040 }
 0xa86   :  { %1134 = vsyncpa [#allocation3], 1 }

</bundles_post_ra>
